<compile_context>
chip_gen: v5e
topology: v5e:2x2
jax: 0.10.0
libtpu: 0.0.40
codegen_flags: <defaults>
</compile_context>

<pallas_src>
import functools

import jax
import jax.numpy as jnp
from jax.experimental import pallas as pl
from jax.experimental.pallas import tpu as pltpu

_VMEM_LIMIT = 32 * 1024 * 1024     # explicit scoped-VMEM request (ok on v5e/v6e/v7x)
_BLOCK_BUDGET = 20 * 1024 * 1024   # per-call budget for (double-buffered) blocks


# ------------------------------ tiling helpers ------------------------------

def _sublane(itemsize):
    # second-to-last block dim must be a multiple of this (dtype-aware)
    return {4: 8, 2: 16, 1: 32}.get(itemsize, 8)


def _round_up(a, m):
    return (a + m - 1) // m * m


def _pick_row_tile(rows, per_row_bytes, itemsize, *, max_tile=1024,
                   budget=_BLOCK_BUDGET):
    """Largest sublane-aligned row tile whose double-buffered blocks fit VMEM."""
    sub = _sublane(itemsize)
    tile = min(_round_up(max(rows, 1), sub), _round_up(max_tile, sub))
    while tile > sub and 2 * tile * per_row_bytes > budget:
        tile = _round_up(tile // 2, sub)
    return max(tile, sub)


# ------------------------ standalone LayerNorm kernel ------------------------
# (used by the generic PreNorm path when `fn` cannot be fused)

def _layernorm_kernel(x_ref, g_ref, b_ref, o_ref, *, eps):
    x = x_ref[...].astype(jnp.float32)                        # (tile, D)
    mean = jnp.mean(x, axis=-1, keepdims=True)
    var = jnp.mean(x * x, axis=-1, keepdims=True) - mean * mean   # one-pass stats
    inv = jax.lax.rsqrt(var + eps)
    y = (x - mean) * inv * g_ref[...] + b_ref[...]
    o_ref[...] = y.astype(o_ref.dtype)


def layer_norm(x, gamma, beta, *, eps=1e-5, row_tile=None):
    """LayerNorm over the last axis, big row tiles, no wrapper-side padding."""
    shape = x.shape
    d = shape[-1]
    x2 = x.reshape(-1, d)
    rows = x2.shape[0]
    itemsize = x2.dtype.itemsize
    if row_tile is None:
        row_tile = _pick_row_tile(rows, 2 * d * itemsize, itemsize, max_tile=1024)

    cost = pl.CostEstimate(flops=8 * rows * d, transcendentals=rows,
                           bytes_accessed=2 * rows * d * itemsize + 2 * d * 4)
    out = pl.pallas_call(
        functools.partial(_layernorm_kernel, eps=eps),
        out_shape=jax.ShapeDtypeStruct((rows, d), x.dtype),
        grid=(pl.cdiv(rows, row_tile),),
        in_specs=[
            pl.BlockSpec((row_tile, d), lambda i: (i, 0)),
            pl.BlockSpec((1, d), lambda i: (0, 0)),
            pl.BlockSpec((1, d), lambda i: (0, 0)),
        ],
        out_specs=pl.BlockSpec((row_tile, d), lambda i: (i, 0)),
        compiler_params=pltpu.CompilerParams(
            dimension_semantics=("parallel",),
            vmem_limit_bytes=_VMEM_LIMIT),
        cost_estimate=cost,
    )(x2, gamma.reshape(1, d).astype(jnp.float32),
      beta.reshape(1, d).astype(jnp.float32))
    return out.reshape(shape)


# ----------------------- fused LayerNorm + matmul kernel ----------------------

def _ln_matmul_kernel(x_ref, w_ref, b_ref, o_ref, *, eps):
    x = x_ref[...].astype(jnp.float32)                        # (tm, D)
    mean = jnp.mean(x, axis=-1, keepdims=True)
    var = jnp.mean(x * x, axis=-1, keepdims=True) - mean * mean
    x_hat = (x - mean) * jax.lax.rsqrt(var + eps)
    y = jnp.dot(x_hat, w_ref[...], preferred_element_type=jnp.float32) + b_ref[...]
    o_ref[...] = y.astype(o_ref.dtype)


def ln_matmul(x, gamma, beta, w, bias, *, eps=1e-5, out_dtype=None):
    """Fused LayerNorm(x; gamma, beta) @ w + bias  (LN over the last axis of x)."""
    shape = x.shape
    d = shape[-1]
    n = w.shape[1]
    x2 = x.reshape(-1, d)
    rows = x2.shape[0]
    out_dtype = out_dtype or x.dtype
    out_itemsize = jnp.dtype(out_dtype).itemsize
    itemsize = x2.dtype.itemsize

    # Fold the LN affine params into the weights (tiny, O(d*n) on parameters):
    #   LN(x) @ W + b = x_hat @ (diag(gamma) W) + (beta @ W + b)
    w_eff = (gamma[:, None] * w).astype(jnp.float32)
    b_eff = (beta[None, :].astype(jnp.float32) @ w.astype(jnp.float32)
             + bias.reshape(1, n).astype(jnp.float32))

    tn = min(n, 256) if n % 128 == 0 else n           # MXU-aligned, lane-dense N tiles
    fixed = 2 * (d * tn + tn) * 4                     # double-buffered W + bias blocks
    per_row = d * itemsize + tn * out_itemsize
    budget = max(_BLOCK_BUDGET - fixed, 2 * _sublane(itemsize) * per_row)
    tm = _pick_row_tile(rows, per_row, itemsize, max_tile=512, budget=budget)

    cost = pl.CostEstimate(
        flops=2 * rows * d * n + 8 * rows * d,
        transcendentals=rows,
        bytes_accessed=rows * d * itemsize + d * n * 4 + n * 4
        + rows * n * out_itemsize)

    out = pl.pallas_call(
        functools.partial(_ln_matmul_kernel, eps=eps),
        out_shape=jax.ShapeDtypeStruct((rows, n), out_dtype),
        grid=(pl.cdiv(rows, tm), pl.cdiv(n, tn)),
        in_specs=[
            pl.BlockSpec((tm, d), lambda i, j: (i, 0)),
            pl.BlockSpec((d, tn), lambda i, j: (0, j)),
            pl.BlockSpec((1, tn), lambda i, j: (0, j)),
        ],
        out_specs=pl.BlockSpec((tm, tn), lambda i, j: (i, j)),
        compiler_params=pltpu.CompilerParams(
            dimension_semantics=("parallel", "parallel"),
            vmem_limit_bytes=_VMEM_LIMIT),
        cost_estimate=cost,
    )(x2, w_eff, b_eff)
    return out.reshape(shape[:-1] + (n,))


# ---------------- fused LayerNorm + matmul + mean-pooling kernel --------------

def _ln_matmul_meanpool_kernel(c_ref, w_ref, b_ref, o_ref, acc_ref, *,
                               eps, seq_len, seq_tile):
    j = pl.program_id(1)

    @pl.when(j == 0)
    def _():
        acc_ref[...] = jnp.zeros_like(acc_ref)

    c = c_ref[...].astype(jnp.float32)                        # (tc, Dc)
    # Zero rows past the true sequence length (ragged last tile). Zeroed rows
    # contribute exactly 0 after normalization: (0 - 0) * rsqrt(0 + eps) == 0.
    row = jax.lax.broadcasted_iota(jnp.int32, c.shape, 0) + j * seq_tile
    c = jnp.where(row < seq_len, c, 0.0)
    mean = jnp.mean(c, axis=-1, keepdims=True)
    var = jnp.mean(c * c, axis=-1, keepdims=True) - mean * mean
    c_hat = (c - mean) * jax.lax.rsqrt(var + eps)
    prod = jnp.dot(c_hat, w_ref[...], preferred_element_type=jnp.float32)  # (tc, N)
    acc_ref[...] += jnp.sum(prod, axis=0, keepdims=True)

    @pl.when(j == pl.num_programs(1) - 1)
    def _():
        o_ref[...] = (acc_ref[...] * (1.0 / seq_len) + b_ref[...]).astype(o_ref.dtype)


def ln_matmul_meanpool(context, gamma, beta, w, *, eps=1e-5, out_dtype=None):
    """Fused mean over the sequence axis of (LayerNorm(context) @ w).

    context: (B, M, Dc)  ->  (B, N); the per-row beta contribution
    mean_m(beta @ w) == beta @ w is added at finalize.
    """
    bsz, m, dc = context.shape
    n = w.shape[1]
    out_dtype = out_dtype or context.dtype
    itemsize = context.dtype.itemsize

    w_eff = (gamma[:, None] * w).astype(jnp.float32)
    b_eff = beta[None, :].astype(jnp.float32) @ w.astype(jnp.float32)  # (1, N)

    fixed = 2 * (dc * n + 2 * n) * 4 + n * 4          # W, bias, out blocks + acc
    per_row = dc * itemsize
    budget = max(_BLOCK_BUDGET - fixed, 2 * _sublane(itemsize) * per_row)
    tc = _pick_row_tile(m, per_row, itemsize, max_tile=512, budget=budget)

    cost = pl.CostEstimate(
        flops=2 * bsz * m * dc * n + 8 * bsz * m * dc,
        transcendentals=bsz * m,
        bytes_accessed=bsz * m * dc * itemsize + dc * n * 4 + n * 4
        + bsz * n * jnp.dtype(out_dtype).itemsize)

    out = pl.pallas_call(
        functools.partial(_ln_matmul_meanpool_kernel, eps=eps,
                          seq_len=m, seq_tile=tc),
        out_shape=jax.ShapeDtypeStruct((bsz, n), out_dtype),
        grid=(bsz, pl.cdiv(m, tc)),
        in_specs=[
            pl.BlockSpec((None, tc, dc), lambda b, j: (b, j, 0)),
            pl.BlockSpec((dc, n), lambda b, j: (0, 0)),
            pl.BlockSpec((1, n), lambda b, j: (0, 0)),
        ],
        out_specs=pl.BlockSpec((1, n), lambda b, j: (b, 0)),
        scratch_shapes=[pltpu.VMEM((1, n), jnp.float32)],
        compiler_params=pltpu.CompilerParams(
            dimension_semantics=("parallel", "arbitrary"),
            vmem_limit_bytes=_VMEM_LIMIT),
        cost_estimate=cost,
    )(context, w_eff, b_eff)
    return out


# ---------------------------------- PreNorm ----------------------------------

class PreNormPallas:
    """JAX/Pallas counterpart of the PyTorch PreNorm module.

    If the wrapped `fn` advertises `supports_fused_prenorm`, the LayerNorm
    parameters are handed to `fn` so it can fuse the normalization into its own
    kernels (no extra HBM round-trip of the activations). Otherwise the
    standalone Pallas LayerNorm is applied first (original module structure).
    """

    def __init__(self, dim, fn, context_dim=None):
        self.fn = fn
        self.dim = dim
        self.context_dim = context_dim
        # nn.LayerNorm default init: weight = ones, bias = zeros, eps = 1e-5
        self.g_x = jnp.ones((dim,), jnp.float32)
        self.b_x = jnp.zeros((dim,), jnp.float32)
        if context_dim is not None:
            self.g_c = jnp.ones((context_dim,), jnp.float32)
            self.b_c = jnp.zeros((context_dim,), jnp.float32)
        else:
            self.g_c = self.b_c = None

    def __call__(self, x, **kwargs):
        if getattr(self.fn, "supports_fused_prenorm", False):
            ctx_ln = None if self.g_c is None else (self.g_c, self.b_c)
            return self.fn(x, x_ln=(self.g_x, self.b_x), context_ln=ctx_ln,
                           **kwargs)
        # generic (unfused) path — identical structure to the PyTorch module
        x = layer_norm(x, self.g_x, self.b_x)
        if self.g_c is not None:
            context = kwargs["context"]
            kwargs = dict(kwargs, context=layer_norm(context, self.g_c, self.b_c))
        return self.fn(x, **kwargs)


# ----------------------- a concrete wrapped `fn` for demo ---------------------
# fn(x, context) = x @ Wx + mean_over_ctx(context @ Wc) + bias
# (the PyTorch `fn` is an arbitrary sub-module; this is the demo instantiation)

def make_fused_fn(dim, context_dim, key):
    k1, k2, k3 = jax.random.split(key, 3)
    wx = jax.random.normal(k1, (dim, dim), jnp.float32) * 0.02
    wc = jax.random.normal(k2, (context_dim, dim), jnp.float32) * 0.02
    bias = jax.random.normal(k3, (dim,), jnp.float32) * 0.02

    def fn(x, *, x_ln, context, context_ln):
        g_x, b_x = x_ln
        g_c, b_c = context_ln
        xw = ln_matmul(x, g_x, b_x, wx, bias)                 # LN(x) @ Wx + bias
        pooled = ln_matmul_meanpool(context, g_c, b_c, wc)    # mean_m(LN(ctx) @ Wc)
        # TODO(synk): this final broadcast-add stays in XLA; the pooled vector
        # crosses a full-context reduction so fusing it into the x-kernel would
        # need a cross-kernel dependency for marginal gain.
        return xw + pooled[:, None, :]

    fn.supports_fused_prenorm = True
    fn.params = (wx, wc, bias)
    return fn


# ---------------------------------- reference ---------------------------------

def _layer_norm_ref(x, g, b, eps=1e-5):
    mean = jnp.mean(x, axis=-1, keepdims=True)
    var = jnp.mean((x - mean) ** 2, axis=-1, keepdims=True)
    return (x - mean) * jax.lax.rsqrt(var + eps) * g + b


if __name__ == "__main__":
    # Lane-dense shapes: last dims are multiples of 128 (feedback item).
    batch, seq, dim = 2, 8, 128
    ctx_seq, context_dim = 16, 128

    key = jax.random.PRNGKey(0)
    kx, kc, kf = jax.random.split(key, 3)
    x = jax.random.normal(kx, (batch, seq, dim), jnp.float32)
    context = jax.random.normal(kc, (batch, ctx_seq, context_dim), jnp.float32)

    fn = make_fused_fn(dim, context_dim, kf)
    module = PreNormPallas(dim, fn, context_dim=context_dim)

    out = jax.block_until_ready(module(x, context=context))

    # pure-JAX reference of the same forward pass
    wx, wc, bias = fn.params
    ref_x = _layer_norm_ref(x, module.g_x, module.b_x)
    ref_c = _layer_norm_ref(context, module.g_c, module.b_c)
    ref = (jnp.einsum("bsd,dn->bsn", ref_x, wx)
           + jnp.mean(jnp.einsum("bmd,dn->bmn", ref_c, wc), axis=1, keepdims=True)
           + bias)
    assert out.shape == (batch, seq, dim)
    assert jnp.allclose(out, ref, atol=1e-4, rtol=1e-4), float(
        jnp.max(jnp.abs(out - ref)))

    # also exercise the generic (unfused) PreNorm path / standalone LN kernel
    ident = PreNormPallas(dim, lambda x, **kw: x)
    out_ln = jax.block_until_ready(ident(x))
    assert jnp.allclose(out_ln, _layer_norm_ref(x, ident.g_x, ident.b_x),
                        atol=1e-4, rtol=1e-4)

    print("KERNEL_OK")
</pallas_src>

<mosaic_0001>
module attributes {stable_mosaic.version = 11 : i64} {
  func.func @_ln_matmul_kernel(%arg0: i32, %arg1: i32, %arg2: memref<16x128xf32, #tpu.memory_space<vmem>>, %arg3: memref<128x128xf32, #tpu.memory_space<vmem>>, %arg4: memref<1x128xf32, #tpu.memory_space<vmem>>, %arg5: memref<16x128xf32, #tpu.memory_space<vmem>>) attributes {dimension_semantics = [#tpu.dimension_semantics<parallel>, #tpu.dimension_semantics<parallel>], iteration_bounds = array<i64: 1, 1>, scalar_prefetch = 0 : i64, scratch_operands = 0 : i64, tpu.core_type = #tpu.core_type<tc>, window_params = [{transform_indices = @transform_0, window_bounds = array<i64: 16, 128>}, {transform_indices = @transform_1, window_bounds = array<i64: 128, 128>}, {transform_indices = @transform_2, window_bounds = array<i64: 1, 128>}, {transform_indices = @transform_3, window_bounds = array<i64: 16, 128>}]} {
    %c0 = arith.constant 0 : index
    %c0_0 = arith.constant 0 : index
    %0 = vector.load %arg2[%c0, %c0_0] : memref<16x128xf32, #tpu.memory_space<vmem>>, vector<16x128xf32>
    %cst = arith.constant dense<0.000000e+00> : vector<16xf32>
    %1 = vector.multi_reduction <add>, %0, %cst [1] : vector<16x128xf32> to vector<16xf32>
    %2 = vector.shape_cast %1 : vector<16xf32> to vector<16x1xf32>
    %cst_1 = arith.constant 1.280000e+02 : f32
    %3 = vector.broadcast %cst_1 : f32 to vector<16x1xf32>
    %4 = arith.divf %2, %3 : vector<16x1xf32>
    %5 = arith.mulf %0, %0 : vector<16x128xf32>
    %cst_2 = arith.constant dense<0.000000e+00> : vector<16xf32>
    %6 = vector.multi_reduction <add>, %5, %cst_2 [1] : vector<16x128xf32> to vector<16xf32>
    %7 = vector.shape_cast %6 : vector<16xf32> to vector<16x1xf32>
    %cst_3 = arith.constant 1.280000e+02 : f32
    %8 = vector.broadcast %cst_3 : f32 to vector<16x1xf32>
    %9 = arith.divf %7, %8 : vector<16x1xf32>
    %10 = arith.mulf %4, %4 : vector<16x1xf32>
    %11 = arith.subf %9, %10 : vector<16x1xf32>
    %12 = vector.broadcast %4 : vector<16x1xf32> to vector<16x128xf32>
    %13 = arith.subf %0, %12 : vector<16x128xf32>
    %cst_4 = arith.constant 9.99999974E-6 : f32
    %14 = vector.broadcast %cst_4 : f32 to vector<16x1xf32>
    %15 = arith.addf %11, %14 : vector<16x1xf32>
    %16 = math.rsqrt %15 : vector<16x1xf32>
    %17 = vector.broadcast %16 : vector<16x1xf32> to vector<16x128xf32>
    %18 = arith.mulf %13, %17 : vector<16x128xf32>
    %c0_5 = arith.constant 0 : index
    %c0_6 = arith.constant 0 : index
    %19 = vector.load %arg3[%c0_5, %c0_6] : memref<128x128xf32, #tpu.memory_space<vmem>>, vector<128x128xf32>
    %cst_7 = arith.constant dense<0.000000e+00> : vector<16x128xf32>
    %20 = tpu.matmul %18, %19, %cst_7 {dimension_numbers = #tpu.dot_dimension_numbers<[1], [0], [0], [1], [0, 0, 1, 1], [], []>} : vector<16x128xf32>, vector<128x128xf32>, vector<16x128xf32> -> vector<16x128xf32>
    %c0_8 = arith.constant 0 : index
    %c0_9 = arith.constant 0 : index
    %21 = vector.load %arg4[%c0_8, %c0_9] : memref<1x128xf32, #tpu.memory_space<vmem>>, vector<1x128xf32>
    %22 = vector.broadcast %21 : vector<1x128xf32> to vector<16x128xf32>
    %23 = arith.addf %20, %22 : vector<16x128xf32>
    %c0_10 = arith.constant 0 : index
    %c0_11 = arith.constant 0 : index
    %24 = vector.load %arg5[%c0_10, %c0_11] : memref<16x128xf32, #tpu.memory_space<vmem>>, vector<16x128xf32>
    tpu.vector_store %arg5[%c0_10, %c0_11], %23 {strides = array<i32>} : memref<16x128xf32, #tpu.memory_space<vmem>>, vector<16x128xf32>,
    return
  }
  func.func @transform_0(%arg0: i32, %arg1: i32) -> (i32, i32) {
    %c0_i32 = arith.constant 0 : i32
    %c0_i32_0 = arith.constant 0 : i32
    return %arg0, %c0_i32 : i32, i32
  }
  func.func @transform_1(%arg0: i32, %arg1: i32) -> (i32, i32) {
    %c0_i32 = arith.constant 0 : i32
    %c0_i32_0 = arith.constant 0 : i32
    return %c0_i32, %arg1 : i32, i32
  }
  func.func @transform_2(%arg0: i32, %arg1: i32) -> (i32, i32) {
    %c0_i32 = arith.constant 0 : i32
    %c0_i32_0 = arith.constant 0 : i32
    return %c0_i32, %arg1 : i32, i32
  }
  func.func @transform_3(%arg0: i32, %arg1: i32) -> (i32, i32) {
    %c0_i32 = arith.constant 0 : i32
    return %arg0, %arg1 : i32, i32
  }
}

</mosaic_0001>

<bundles_post_ra>
// kernel: tpu_custom_call.1
= control target key start
LH: loop header
LB: loop body
LE: loop exit
PB: predicated region body
PF: predicated region fallthrough
CT: control target
= control target key end

     0   :  { %8 = vsyncpa [#allocation3], 0  ;;  %s331_s0 = inlined_call_operand.hbm [shape: f32[16,128], index: 0, kind: input, shape index: {}]   ;;  %s332_s1 = inlined_call_operand.hbm [shape: f32[128,128], index: 1, kind: input, shape index: {}]   ;;  %s333_s2 = inlined_call_operand.vmem [shape: f32[1,128], index: 2, kind: input, shape index: {}]   ;;  %s334_s3 = inlined_call_operand.hbm [shape: f32[16,128], index: 3, kind: output, shape index: {}]  }
   0x1   :  { %9 = vsyncpa [#allocation6], 0 }
   0x2   :  { %10 = vsyncpa [#allocation4], 0  ;;  %s15_s14 = sshll.u32 %s331_s0, 4  ;;  %s272_s15 = smov [#allocation2]   ;;  %s16_s14 = int_to_ptr.hbm [resolvable:$true] %s15_s14 }
   0x3   :  { %s17_s16 = sshll.u32 %s272_s15, 4  ;;  %s28_s19 = sshll.u32 %s332_s1, 4  ;;  %s18_s16 = int_to_ptr.vmem [resolvable:$true] %s17_s16  ;;  %s29_s19 = int_to_ptr.hbm [resolvable:$true] %s28_s19 }
   0x4   :  { %s273_s20 = smov 128   ;;  %s274_s21 = smov 8  }
   0x5   :  { %23 = dma.hbm_to_vmem [thread:$0]  %s16_s14, 256, %s18_s16, [#allocation3], %s273_s20, %s273_s20, %s274_s21  }
   0x6   :  { %s275_s22 = smov [#allocation5]  }
   0x7   :  { %s30_s23 = sshll.u32 %s275_s22, 4  ;;  %s31_s23 = int_to_ptr.vmem [resolvable:$true] %s30_s23 }
   0x8   :  { %36 = dma.hbm_to_vmem [thread:$0]  %s29_s19, 2048, %s31_s23, [#allocation6], %s273_s20, %s273_s20, %s274_s21  }
   0x9   :  { %266 = dma.done.wait [#allocation3], 256  }
   0xa   :  { %267 = vsyncadd [#allocation3], 4294967040 }
   0xb   :  { %268 = dma.done.wait [#allocation6], 2048  }
   0xc   :  { %269 = vsyncadd [#allocation6], 4294965248  ;;  %v310_v0 = vld [vmem:[#allocation2] sm:$0xff]  ;;  %v115_v1 = vld [vmem:[#allocation5 + $0x78] sm:$0xff]  ;;  %v276_v8 = vmov 128.0   ;;  %s277_s24 = smov [#allocation7]  }
   0xd   :  { %49 = vadd.xlane.f32.xlu0 %v310_v0  ;;  %v62_v2 = vmul.f32 %v310_v0, %v310_v0  ;;  %120 = vmatpush.msra.mxu0 %v115_v1  ;;  %v114_v3 = vld [vmem:[#allocation5 + $0x70] sm:$0xff]  ;;  %v315_v4 = vld [vmem:[#allocation2 + $0x8] sm:$0xff]  ;;  %v113_v6 = vld [vmem:[#allocation5 + $0x68] sm:$0xff]  ;;  %188 = vrcp.f32 %v276_v8  ;;  %s149_s25 = sshll.u32 %s277_s24, 4  ;;  %s151_s28 = sshll.u32 %s334_s3, 4  ;;  %s150_s25 = int_to_ptr.vmem [resolvable:$true] %s149_s25  ;;  %s152_s28 = int_to_ptr.hbm [resolvable:$true] %s151_s28 }
   0xe   :  { %165 = vmatpush.msra.mxu1 %v115_v1  ;;  %v63_v5 = vmul.f32 %v315_v4, %v315_v4  ;;  %v112_v7 = vld [vmem:[#allocation5 + $0x60] sm:$0xff]  ;;  %v111_v9 = vld [vmem:[#allocation5 + $0x58] sm:$0xff]  ;;  %v110_v10 = vld [vmem:[#allocation5 + $0x50] sm:$0xff] }
   0xf   :  { %64 = vadd.xlane.f32.xlu1 %v62_v2  ;;  %121 = vmatpush.msra.mxu0 %v114_v3  ;;  %v109_v11 = vld [vmem:[#allocation5 + $0x48] sm:$0xff]  ;;  %v108_v13 = vld [vmem:[#allocation5 + $0x40] sm:$0xff]  ;;  %v107_v14 = vld [vmem:[#allocation5 + $0x38] sm:$0xff] }
  0x10   :  { %166 = vmatpush.msra.mxu1 %v114_v3  ;;  %v106_v16 = vld [vmem:[#allocation5 + $0x30] sm:$0xff]  ;;  %v105_v17 = vld [vmem:[#allocation5 + $0x28] sm:$0xff]  ;;  %v104_v19 = vld [vmem:[#allocation5 + $0x20] sm:$0xff] }
  0x11   :  { %122 = vmatpush.msra.mxu0 %v113_v6  ;;  %v103_v20 = vld [vmem:[#allocation5 + $0x18] sm:$0xff]  ;;  %v102_v22 = vld [vmem:[#allocation5 + $0x10] sm:$0xff]  ;;  %v101_v23 = vld [vmem:[#allocation5 + $0x8] sm:$0xff] }
  0x12   :  { %167 = vmatpush.msra.mxu1 %v113_v6  ;;  %v100_v25 = vld [vmem:[#allocation5] sm:$0xff]  ;;  %v187_v59 = vld [vmem:[%s333_s2] ss:$0 sm:$0xff] }
  0x13   :  { %123 = vmatpush.msra.mxu0 %v112_v7  ;;  %v189_v12 = vpop.eup %188 }
  0x14   :  { %168 = vmatpush.msra.mxu1 %v112_v7  ;;  %v54_v15 = vmul.f32 128.0, %v189_v12  ;;  %vm58_vm0 = vweird.f32 %v189_v12 }
  0x15   :  { %51 = vadd.xlane.f32.xlu0 %v315_v4  ;;  %124 = vmatpush.msra.mxu0 %v111_v9 }
  0x16   :  { %169 = vmatpush.msra.mxu1 %v111_v9  ;;  %v55_v18 = vsub.f32 1.0, %v54_v15 }
  0x17   :  { %66 = vadd.xlane.f32.xlu1 %v63_v5  ;;  %125 = vmatpush.msra.mxu0 %v110_v10 }
  0x18   :  { %170 = vmatpush.msra.mxu1 %v110_v10  ;;  %v56_v21 = vmul.f32 %v189_v12, %v55_v18 }
  0x19   :  { %126 = vmatpush.msra.mxu0 %v109_v11 }
  0x1a   :  { %171 = vmatpush.msra.mxu1 %v109_v11  ;;  %v57_v24 = vadd.f32 %v189_v12, %v56_v21 }
  0x1b   :  { %127 = vmatpush.msra.mxu0 %v108_v13 }
  0x1c   :  { %172 = vmatpush.msra.mxu1 %v108_v13  ;;  %v59_v26 = vsel %vm58_vm0, %v189_v12, %v57_v24 }
  0x1d   :  { %128 = vmatpush.msra.mxu0 %v107_v14 }
  0x1e   :  { %173 = vmatpush.msra.mxu1 %v107_v14 }
  0x1f   :  { %129 = vmatpush.msra.mxu0 %v106_v16 }
  0x20   :  { %174 = vmatpush.msra.mxu1 %v106_v16 }
  0x21   :  { %130 = vmatpush.msra.mxu0 %v105_v17 }
  0x22   :  { %175 = vmatpush.msra.mxu1 %v105_v17 }
  0x23   :  { %131 = vmatpush.msra.mxu0 %v104_v19 }
  0x24   :  { %176 = vmatpush.msra.mxu1 %v104_v19 }
  0x25   :  { %132 = vmatpush.msra.mxu0 %v103_v20 }
  0x26   :  { %177 = vmatpush.msra.mxu1 %v103_v20 }
  0x27   :  { %133 = vmatpush.msra.mxu0 %v102_v22 }
  0x28   :  { %178 = vmatpush.msra.mxu1 %v102_v22 }
  0x29   :  { %134 = vmatpush.msra.mxu0 %v101_v23 }
  0x2a   :  { %179 = vmatpush.msra.mxu1 %v101_v23 }
  0x2b   :  { %135 = vmatpush.msra.mxu0 %v100_v25 }
  0x2c   :  { %180 = vmatpush.msra.mxu1 %v100_v25 }
  0x80   :  { %v50_v27 = vpop.xlane.xlu0 %49 }
  0x81   :  { %v60_v28 = vmul.f32 %v59_v26, %v50_v27 }
  0x82   :  { %v65_v29 = vpop.xlane.xlu1 %64 }
  0x83   :  { %v70_v30 = vmul.f32 %v60_v28, %v60_v28  ;;  %v68_v31 = vmul.f32 %v65_v29, %v59_v26  ;;  %v74_v49 = vsub.f32 %v310_v0, %v60_v28 }
  0x85   :  { %v72_v32 = vsub.f32 %v68_v31, %v70_v30 }
  0x87   :  { %v76_v33 = vadd.f32 1e-05, %v72_v32 }
  0x88   :  { %v52_v34 = vpop.xlane.xlu0 %51 }
  0x89   :  { %190 = vrsqrt.f32 %v76_v33  ;;  %v61_v35 = vmul.f32 %v59_v26, %v52_v34  ;;  %vm84_vm2 = vweird.f32 %v76_v33 }
  0x8a   :  { %v67_v36 = vpop.xlane.xlu1 %66 }
  0x8b   :  { %v71_v37 = vmul.f32 %v61_v35, %v61_v35  ;;  %v69_v38 = vmul.f32 %v67_v36, %v59_v26  ;;  %v75_v56 = vsub.f32 %v315_v4, %v61_v35 }
  0x8d   :  { %v73_v39 = vsub.f32 %v69_v38, %v71_v37 }
  0x8f   :  { %v191_v40 = vpop.eup %190  ;;  %v77_v41 = vadd.f32 1e-05, %v73_v39 }
  0x90   :  { %v79_v42 = vmul.f32 %v191_v40, %v76_v33  ;;  %vm85_vm1 = vweird.f32 %v191_v40 }
  0x91   :  { %192 = vrsqrt.f32 %v77_v41  ;;  %vm86_vm3 = vmor %vm84_vm2, %vm85_vm1  ;;  %vm94_vm5 = vweird.f32 %v77_v41 }
  0x92   :  { %v80_v43 = vmul.f32 %v191_v40, %v79_v42 }
  0x94   :  { %v81_v44 = vmul.f32 0.5, %v80_v43 }
  0x96   :  { %v82_v45 = vsub.f32 1.5, %v81_v44 }
  0x97   :  { %v193_v46 = vpop.eup %192 }
  0x98   :  { %v89_v47 = vmul.f32 %v193_v46, %v77_v41  ;;  %v83_v48 = vmul.f32 %v191_v40, %v82_v45  ;;  %vm95_vm4 = vweird.f32 %v193_v46 }
  0x99   :  { %vm96_vm6 = vmor %vm94_vm5, %vm95_vm4 }
  0x9a   :  { %v90_v50 = vmul.f32 %v193_v46, %v89_v47  ;;  %v87_v51 = vsel %vm86_vm3, %v191_v40, %v83_v48 }
  0x9b   :  { %v98_v52 = vmul.f32 %v87_v51, %v74_v49 }
  0x9c   :  { %v91_v53 = vmul.f32 0.5, %v90_v50 }
  0x9d   :  { %136 = vmatmul.f32.vlgmr.msra.gmra.mxu0 %v98_v52 }
  0x9e   :  { %v92_v54 = vsub.f32 1.5, %v91_v53 }
  0xa0   :  { %v93_v55 = vmul.f32 %v193_v46, %v92_v54 }
  0xa2   :  { %v97_v57 = vsel %vm96_vm6, %v193_v46, %v93_v55 }
  0xa3   :  { %v99_v58 = vmul.f32 %v97_v57, %v75_v56 }
  0xa5   :  { %139 = vmatmul.f32.vlgmr.msra.gmra.mxu1 %v99_v58 }
 0x11a   :  { %v137_v60 = vpop.f32.mrf.mxu0 }
 0x11b   :  { %v138_v61 = vadd.f32 %v187_v59, %v137_v60 }
 0x11d   :  { %143 = vst [vmem:[#allocation7] sm:$0xff] %v138_v61 }
 0x122   :  { %v140_v62 = vpop.f32.mrf.mxu1 }
 0x123   :  { %v141_v63 = vadd.f32 %v187_v59, %v140_v62 }
 0x125   :  { %144 = vst [vmem:[#allocation7 + $0x8] sm:$0xff] %v141_v63 }
 0x126   :  { %157 = dma.vmem_to_hbm [thread:$0]  %s150_s25, 256, %s152_s28, [#allocation4], %s273_s20, %s273_s20, %s274_s21  }
 0x127   :  { %270 = dma.done.wait [#allocation4], 256  }
 0x128   :  { %271 = vsyncadd [#allocation4], 4294967040 }
 0x129   :  { %162 = vsyncpa [#allocation3], 1 }
 0x12a   :  { %163 = vsyncpa [#allocation6], 1 }
 0x12b   :  { %164 = vsyncpa [#allocation4], 1 }

</bundles_post_ra>
